<compile_context>
chip_gen: v6e
topology: v6e:2x2x1
jax: 0.10.0
libtpu: 0.0.40
codegen_flags: <defaults>
</compile_context>

<pallas_src>
import functools
import math

import jax
import jax.numpy as jnp
from jax.experimental import pallas as pl
from jax.experimental.pallas import tpu as pltpu


# ----------------------------------------------------------------------------
# Generation-aware sizing helpers
# ----------------------------------------------------------------------------

def _vmem_params():
    """(target block bytes, vmem_limit_bytes) — v7x has 64 MiB VMEM, v5e/v6e 128 MiB."""
    try:
        cap = getattr(pltpu.get_tpu_info(), "vmem_capacity_bytes", None)
    except Exception:
        cap = None
    if cap is not None and cap >= 96 * 1024 * 1024:       # v5e / v6e
        return 4 * 1024 * 1024, 64 * 1024 * 1024
    return 2 * 1024 * 1024, 28 * 1024 * 1024               # v7x or unknown (conservative)


def _pick_lane_width(M, c):
    """Lane (last-dim) width for the general path: multiple of c so the channel pattern
    repeats per row and, whenever M*c % 128 == 0, a multiple of 128 for unmasked vst."""
    total = M * c
    if c % 128 == 0:
        return c
    lane = (c * 128) // math.gcd(c, 128)                   # lcm(c, 128)
    if total % lane == 0:
        return lane
    # Note: if total % 128 == 0 the lcm always divides (c/gcd is odd), so this fallback
    # only fires when M*c is not a multiple of 128 — correct, but masked partial stores.
    return c


def _pick_row_tile(rows, lane, itemsize, target_bytes, want_split):
    """Second-to-last block dim: sublane-aligned, <= ~target_bytes per block, and (when
    want_split) small enough that the parallel axes yield >= 2 blocks (v7x dual-TC)."""
    sub = {4: 8, 2: 16, 1: 32}.get(itemsize, 8)
    if rows <= sub:
        return rows                                        # full extent (legal block)
    cap = max(sub, (target_bytes // max(1, lane * itemsize)) // sub * sub)
    if want_split:
        cap = min(cap, max(sub, (rows // 2) // sub * sub))
    if rows <= cap:
        return rows
    t = cap
    while t >= sub:                                        # prefer an exact divisor
        if rows % t == 0:
            return t
        t -= sub
    return cap                                             # cdiv grid, masked tail block


# ----------------------------------------------------------------------------
# Kernels
# ----------------------------------------------------------------------------

def _tsm_carry_kernel(in_ref, out_ref, carry_ref, ch_ref, *, c, fold, lane, tile_r):
    """General path.  Time grid = T+1; step t reads feat[min(t, T-1)] and (t > 0) writes
    out[t-1]:
        channels [:fold]       <- feat[t-2]   (slot carry; == feat[0] at t == 1)
        channels [fold:2fold]  <- feat[t]     (freshly loaded, clamped at the end)
        channels [2fold:]      <- feat[t-1]   (other slot carry)
    Boundary frames keep their original values automatically."""
    t = pl.program_id(2)
    r = pl.program_id(1)
    slot = jax.lax.rem(t, 2)
    nxt = in_ref[...]                                      # (tile_r, lane)

    @pl.when(t == 0)
    def _():
        # Prime both slots with feat[0]; precompute channel ids once per (b, r) series.
        carry_ref[0] = nxt
        carry_ref[1] = nxt
        row = jax.lax.broadcasted_iota(jnp.int32, (tile_r, lane), 0)
        col = jax.lax.broadcasted_iota(jnp.int32, (tile_r, lane), 1)
        ch_ref[...] = jax.lax.rem((r * tile_r + row) * lane + col, c)
        # (no out write: this block is fully rewritten at t == 1 before any writeback)

    @pl.when(t > 0)
    def _():
        ch = ch_ref[...]
        prev = carry_ref[slot]                             # feat[t-2]
        cur = carry_ref[1 - slot]                          # feat[t-1]
        out_ref[...] = jnp.where(ch < fold, prev,
                                 jnp.where(ch < 2 * fold, nxt, cur))
        # Slot rotation: overwrite the slot that held feat[t-2] with feat[t].
        @pl.when(slot == 0)
        def _():
            carry_ref[0] = nxt

        @pl.when(slot == 1)
        def _():
            carry_ref[1] = nxt


def _tsm_slab_kernel(in_ref, out_ref, carry_ref, *, fold):
    """Aliased path.  Blocks cover only channels [0 : 2*fold).  Time grid = T+1;
    step t reads feat[min(t, T-1)] slab and (t > 0) writes out[t-1]:
        lanes [:fold]       <- feat[t-2] (slot carry; == feat[0] at t == 1)
        lanes [fold:2fold]  <- feat[t]   (freshly loaded, clamped at the end)
    Channels >= 2*fold are never touched: they pass through the aliased buffer."""
    t = pl.program_id(2)
    slot = jax.lax.rem(t, 2)
    nxt = in_ref[...]                                      # (tile_m, 2*fold)

    @pl.when(t == 0)
    def _():
        carry_ref[0] = nxt
        carry_ref[1] = nxt

    @pl.when(t > 0)
    def _():
        ch = jax.lax.broadcasted_iota(jnp.int32, nxt.shape, 1)
        out_ref[...] = jnp.where(ch < fold, carry_ref[slot], nxt)

        @pl.when(slot == 0)
        def _():
            carry_ref[0] = nxt

        @pl.when(slot == 1)
        def _():
            carry_ref[1] = nxt


# ----------------------------------------------------------------------------
# pallas_call wrappers
# ----------------------------------------------------------------------------

def _shift_carry(feat, c, fold, target_bytes, vmem_limit):
    """General path: any c / fold.  1 HBM read + 1 HBM write per element (full array)."""
    bs, T, M, _ = feat.shape
    itemsize = jnp.dtype(feat.dtype).itemsize

    lane = _pick_lane_width(M, c)
    rows = (M * c) // lane
    f = feat.reshape(bs, T, rows, lane)
    tile_r = _pick_row_tile(rows, lane, itemsize, target_bytes, want_split=(bs < 2))

    kernel = functools.partial(_tsm_carry_kernel, c=c, fold=fold, lane=lane, tile_r=tile_r)

    out = pl.pallas_call(
        kernel,
        out_shape=jax.ShapeDtypeStruct(f.shape, f.dtype),
        grid=(bs, pl.cdiv(rows, tile_r), T + 1),
        in_specs=[pl.BlockSpec((None, None, tile_r, lane),
                               lambda b, r, t: (b, jnp.minimum(t, T - 1), r, 0))],
        out_specs=pl.BlockSpec((None, None, tile_r, lane),
                               lambda b, r, t: (b, jnp.maximum(t - 1, 0), r, 0)),
        scratch_shapes=[pltpu.VMEM((2, tile_r, lane), f.dtype),   # two-frame slot carry
                        pltpu.VMEM((tile_r, lane), jnp.int32)],   # channel ids
        compiler_params=pltpu.CompilerParams(
            dimension_semantics=("parallel", "parallel", "arbitrary"),
            vmem_limit_bytes=vmem_limit),
    )(f)

    return out.reshape(bs, T, M, c)


def _shift_slab(feat, fold, target_bytes, vmem_limit):
    """Aliased path (2*fold % 128 == 0): only the shifted slab [0:2*fold) is moved;
    the rest of the (aliased) output keeps the input values.  Donate x for the full win."""
    bs, T, M, _c = feat.shape
    W = 2 * fold
    itemsize = jnp.dtype(feat.dtype).itemsize
    tile_m = _pick_row_tile(M, W, itemsize, target_bytes, want_split=(bs < 2))

    kernel = functools.partial(_tsm_slab_kernel, fold=fold)

    return pl.pallas_call(
        kernel,
        out_shape=jax.ShapeDtypeStruct(feat.shape, feat.dtype),
        grid=(bs, pl.cdiv(M, tile_m), T + 1),
        in_specs=[pl.BlockSpec((None, None, tile_m, W),
                               lambda b, m, t: (b, jnp.minimum(t, T - 1), m, 0))],
        out_specs=pl.BlockSpec((None, None, tile_m, W),
                               lambda b, m, t: (b, jnp.maximum(t - 1, 0), m, 0)),
        scratch_shapes=[pltpu.VMEM((2, tile_m, W), feat.dtype)],  # two-frame slot carry
        input_output_aliases={0: 0},
        compiler_params=pltpu.CompilerParams(
            dimension_semantics=("parallel", "parallel", "arbitrary"),
            vmem_limit_bytes=vmem_limit),
    )(feat)


def temporal_shift(x, batch_size, frame_len, fold_div=8):
    """Pallas implementation of TemporalShift.forward."""
    B, num_heads, N, c = x.shape
    assert B % (batch_size * frame_len) == 0
    fold = c // fold_div
    if fold == 0 or frame_len == 1:
        return x                                    # shift is the identity

    G = B // (batch_size * frame_len)
    M = G * num_heads * N
    feat = x.reshape(batch_size, frame_len, M, c)
    target_bytes, vmem_limit = _vmem_params()

    if (2 * fold) % 128 == 0 and 2 * fold <= c:
        out = _shift_slab(feat, fold, target_bytes, vmem_limit)
    else:
        out = _shift_carry(feat, c, fold, target_bytes, vmem_limit)

    return out.reshape(B, num_heads, N, c)


# ----------------------------------------------------------------------------
# Pure-JAX reference (mirrors the PyTorch code)
# ----------------------------------------------------------------------------

def _reference_shift(x, batch_size, frame_len, fold_div=8):
    B, num_heads, N, c = x.shape
    fold = c // fold_div
    feat = x.reshape(batch_size, frame_len, -1, num_heads, N, c)
    out = feat
    out = out.at[:, 1:, :, :, :, :fold].set(feat[:, :-1, :, :, :, :fold])
    out = out.at[:, :-1, :, :, :, fold:2 * fold].set(feat[:, 1:, :, :, :, fold:2 * fold])
    return out.reshape(B, num_heads, N, c)


if __name__ == "__main__":
    key = jax.random.PRNGKey(0)
    k1, k2 = jax.random.split(key)

    shift = jax.jit(temporal_shift, static_argnums=(1, 2, 3))

    # --- 1) General carry path: c = 32 -> fold = 4 (slab not lane-aligned), G = 2 ------
    batch_size, frame_len, G, num_heads, N, c = 2, 4, 2, 4, 16, 32
    B = batch_size * frame_len * G
    x = jax.random.normal(k1, (B, num_heads, N, c), dtype=jnp.float32)
    out = jax.block_until_ready(shift(x, batch_size, frame_len, 8))
    ref = _reference_shift(x, batch_size, frame_len, 8)
    assert out.shape == x.shape and out.dtype == x.dtype
    assert bool(jnp.array_equal(out, ref)), "carry-path output mismatch vs reference"

    # --- 2) Aliased slab path: c = 1024 -> fold = 128 (2*fold % 128 == 0) --------------
    # TODO(synk): callers should donate x (jax.jit(..., donate_argnums=(0,))) so the
    # unshifted channels are never copied; without donation XLA adds a defensive copy.
    batch_size2, frame_len2, num_heads2, N2, c2 = 2, 3, 2, 8, 1024
    B2 = batch_size2 * frame_len2
    x2 = jax.random.normal(k2, (B2, num_heads2, N2, c2), dtype=jnp.float32)
    out2 = jax.block_until_ready(shift(x2, batch_size2, frame_len2, 8))
    ref2 = _reference_shift(x2, batch_size2, frame_len2, 8)
    assert out2.shape == x2.shape and out2.dtype == x2.dtype
    assert bool(jnp.array_equal(out2, ref2)), "slab-path output mismatch vs reference"

    print("KERNEL_OK")
</pallas_src>

<mosaic_0001>
module attributes {stable_mosaic.version = 11 : i64} {
  func.func @_tsm_carry_kernel(%arg0: i32, %arg1: i32, %arg2: i32, %arg3: memref<1x1x32x128xf32, #tpu.memory_space<vmem>>, %arg4: memref<1x1x32x128xf32, #tpu.memory_space<vmem>>, %arg5: memref<2x32x128xf32, #tpu.memory_space<vmem>>, %arg6: memref<32x128xi32, #tpu.memory_space<vmem>>) attributes {dimension_semantics = [#tpu.dimension_semantics<parallel>, #tpu.dimension_semantics<parallel>, #tpu.dimension_semantics<arbitrary>], iteration_bounds = array<i64: 2, 1, 5>, scalar_prefetch = 0 : i64, scratch_operands = 2 : i64, tpu.core_type = #tpu.core_type<tc>, window_params = [{transform_indices = @transform_0, window_bounds = array<i64: 1, 1, 32, 128>}, {transform_indices = @transform_1, window_bounds = array<i64: 1, 1, 32, 128>}]} {
    %c2_i32 = arith.constant 2 : i32
    %0 = arith.remsi %arg2, %c2_i32 : i32
    %c0 = arith.constant 0 : index
    %c0_0 = arith.constant 0 : index
    %c0_1 = arith.constant 0 : index
    %c0_2 = arith.constant 0 : index
    %1 = vector.load %arg3[%c0, %c0_0, %c0_1, %c0_2] : memref<1x1x32x128xf32, #tpu.memory_space<vmem>>, vector<1x1x32x128xf32>
    %2 = vector.shape_cast %1 : vector<1x1x32x128xf32> to vector<32x128xf32>
    %c0_i32 = arith.constant 0 : i32
    %3 = arith.cmpi eq, %arg2, %c0_i32 : i32
    %4 = arith.extui %3 : i1 to i32
    %c0_i32_3 = arith.constant 0 : i32
    %5 = arith.cmpi ne, %4, %c0_i32_3 : i32
    scf.if %5 {
      %c0_6 = arith.constant 0 : index
      %c0_7 = arith.constant 0 : index
      %c0_8 = arith.constant 0 : index
      %9 = vector.load %arg5[%c0_6, %c0_7, %c0_8] : memref<2x32x128xf32, #tpu.memory_space<vmem>>, vector<1x32x128xf32>
      %10 = vector.shape_cast %9 : vector<1x32x128xf32> to vector<32x128xf32>
      %11 = vector.shape_cast %2 : vector<32x128xf32> to vector<1x32x128xf32>
      tpu.vector_store %arg5[%c0_6, %c0_7, %c0_8], %11 {strides = array<i32>} : memref<2x32x128xf32, #tpu.memory_space<vmem>>, vector<1x32x128xf32>,
      %c1 = arith.constant 1 : index
      %c0_9 = arith.constant 0 : index
      %c0_10 = arith.constant 0 : index
      %12 = vector.load %arg5[%c1, %c0_9, %c0_10] : memref<2x32x128xf32, #tpu.memory_space<vmem>>, vector<1x32x128xf32>
      %13 = vector.shape_cast %12 : vector<1x32x128xf32> to vector<32x128xf32>
      %14 = vector.shape_cast %2 : vector<32x128xf32> to vector<1x32x128xf32>
      tpu.vector_store %arg5[%c1, %c0_9, %c0_10], %14 {strides = array<i32>} : memref<2x32x128xf32, #tpu.memory_space<vmem>>, vector<1x32x128xf32>,
      %15 = tpu.iota {dimensions = array<i32: 0>} : vector<32x128xi32>
      %16 = tpu.iota {dimensions = array<i32: 1>} : vector<32x128xi32>
      %c32_i32 = arith.constant 32 : i32
      %17 = arith.muli %arg1, %c32_i32 : i32
      %18 = vector.broadcast %17 : i32 to vector<32x128xi32>
      %19 = arith.addi %18, %15 : vector<32x128xi32>
      %c128_i32 = arith.constant 128 : i32
      %20 = vector.broadcast %c128_i32 : i32 to vector<32x128xi32>
      %21 = arith.muli %19, %20 : vector<32x128xi32>
      %22 = arith.addi %21, %16 : vector<32x128xi32>
      %c32_i32_11 = arith.constant 32 : i32
      %23 = vector.broadcast %c32_i32_11 : i32 to vector<32x128xi32>
      %24 = arith.remsi %22, %23 : vector<32x128xi32>
      %c0_12 = arith.constant 0 : index
      %c0_13 = arith.constant 0 : index
      %25 = vector.load %arg6[%c0_12, %c0_13] : memref<32x128xi32, #tpu.memory_space<vmem>>, vector<32x128xi32>
      tpu.vector_store %arg6[%c0_12, %c0_13], %24 {strides = array<i32>} : memref<32x128xi32, #tpu.memory_space<vmem>>, vector<32x128xi32>,
    } else {
    }
    %c0_i32_4 = arith.constant 0 : i32
    %6 = arith.cmpi sgt, %arg2, %c0_i32_4 : i32
    %7 = arith.extui %6 : i1 to i32
    %c0_i32_5 = arith.constant 0 : i32
    %8 = arith.cmpi ne, %7, %c0_i32_5 : i32
    scf.if %8 {
      %c0_6 = arith.constant 0 : index
      %c0_7 = arith.constant 0 : index
      %9 = vector.load %arg6[%c0_6, %c0_7] : memref<32x128xi32, #tpu.memory_space<vmem>>, vector<32x128xi32>
      %10 = arith.index_cast %0 : i32 to index
      %c0_8 = arith.constant 0 : index
      %c0_9 = arith.constant 0 : index
      %11 = vector.load %arg5[%10, %c0_8, %c0_9] : memref<2x32x128xf32, #tpu.memory_space<vmem>>, vector<1x32x128xf32>
      %12 = vector.shape_cast %11 : vector<1x32x128xf32> to vector<32x128xf32>
      %c1_i32 = arith.constant 1 : i32
      %13 = arith.subi %c1_i32, %0 : i32
      %14 = arith.index_cast %13 : i32 to index
      %c0_10 = arith.constant 0 : index
      %c0_11 = arith.constant 0 : index
      %15 = vector.load %arg5[%14, %c0_10, %c0_11] : memref<2x32x128xf32, #tpu.memory_space<vmem>>, vector<1x32x128xf32>
      %16 = vector.shape_cast %15 : vector<1x32x128xf32> to vector<32x128xf32>
      %c4_i32 = arith.constant 4 : i32
      %17 = vector.broadcast %c4_i32 : i32 to vector<32x128xi32>
      %18 = arith.cmpi slt, %9, %17 : vector<32x128xi32>
      %c8_i32 = arith.constant 8 : i32
      %19 = vector.broadcast %c8_i32 : i32 to vector<32x128xi32>
      %20 = arith.cmpi slt, %9, %19 : vector<32x128xi32>
      %21 = arith.select %20, %2, %16 : vector<32x128xi1>, vector<32x128xf32>
      %22 = arith.select %18, %12, %21 : vector<32x128xi1>, vector<32x128xf32>
      %c0_12 = arith.constant 0 : index
      %c0_13 = arith.constant 0 : index
      %c0_14 = arith.constant 0 : index
      %c0_15 = arith.constant 0 : index
      %23 = vector.load %arg4[%c0_12, %c0_13, %c0_14, %c0_15] : memref<1x1x32x128xf32, #tpu.memory_space<vmem>>, vector<1x1x32x128xf32>
      %24 = vector.shape_cast %23 : vector<1x1x32x128xf32> to vector<32x128xf32>
      %25 = vector.shape_cast %22 : vector<32x128xf32> to vector<1x1x32x128xf32>
      tpu.vector_store %arg4[%c0_12, %c0_13, %c0_14, %c0_15], %25 {strides = array<i32>} : memref<1x1x32x128xf32, #tpu.memory_space<vmem>>, vector<1x1x32x128xf32>,
      %c0_i32_16 = arith.constant 0 : i32
      %26 = arith.cmpi eq, %0, %c0_i32_16 : i32
      %27 = arith.extui %26 : i1 to i32
      %c0_i32_17 = arith.constant 0 : i32
      %28 = arith.cmpi ne, %27, %c0_i32_17 : i32
      scf.if %28 {
        %c0_20 = arith.constant 0 : index
        %c0_21 = arith.constant 0 : index
        %c0_22 = arith.constant 0 : index
        %32 = vector.load %arg5[%c0_20, %c0_21, %c0_22] : memref<2x32x128xf32, #tpu.memory_space<vmem>>, vector<1x32x128xf32>
        %33 = vector.shape_cast %32 : vector<1x32x128xf32> to vector<32x128xf32>
        %34 = vector.shape_cast %2 : vector<32x128xf32> to vector<1x32x128xf32>
        tpu.vector_store %arg5[%c0_20, %c0_21, %c0_22], %34 {strides = array<i32>} : memref<2x32x128xf32, #tpu.memory_space<vmem>>, vector<1x32x128xf32>,
      } else {
      }
      %c1_i32_18 = arith.constant 1 : i32
      %29 = arith.cmpi eq, %0, %c1_i32_18 : i32
      %30 = arith.extui %29 : i1 to i32
      %c0_i32_19 = arith.constant 0 : i32
      %31 = arith.cmpi ne, %30, %c0_i32_19 : i32
      scf.if %31 {
        %c1 = arith.constant 1 : index
        %c0_20 = arith.constant 0 : index
        %c0_21 = arith.constant 0 : index
        %32 = vector.load %arg5[%c1, %c0_20, %c0_21] : memref<2x32x128xf32, #tpu.memory_space<vmem>>, vector<1x32x128xf32>
        %33 = vector.shape_cast %32 : vector<1x32x128xf32> to vector<32x128xf32>
        %34 = vector.shape_cast %2 : vector<32x128xf32> to vector<1x32x128xf32>
        tpu.vector_store %arg5[%c1, %c0_20, %c0_21], %34 {strides = array<i32>} : memref<2x32x128xf32, #tpu.memory_space<vmem>>, vector<1x32x128xf32>,
      } else {
      }
    } else {
    }
    return
  }
  func.func @transform_0(%arg0: i32, %arg1: i32, %arg2: i32) -> (i32, i32, i32, i32) {
    %c3_i32 = arith.constant 3 : i32
    %0 = arith.minsi %arg2, %c3_i32 : i32
    %c0_i32 = arith.constant 0 : i32
    %c0_i32_0 = arith.constant 0 : i32
    return %arg0, %0, %arg1, %c0_i32 : i32, i32, i32, i32
  }
  func.func @transform_1(%arg0: i32, %arg1: i32, %arg2: i32) -> (i32, i32, i32, i32) {
    %c1_i32 = arith.constant 1 : i32
    %0 = arith.subi %arg2, %c1_i32 : i32
    %c0_i32 = arith.constant 0 : i32
    %1 = arith.maxsi %0, %c0_i32 : i32
    %c0_i32_0 = arith.constant 0 : i32
    %c0_i32_1 = arith.constant 0 : i32
    return %arg0, %1, %arg1, %c0_i32_0 : i32, i32, i32, i32
  }
}

</mosaic_0001>

<bundles_post_ra>
// kernel: temporal_shift.1
= control target key start
LH: loop header
LB: loop body
LE: loop exit
PB: predicated region body
PF: predicated region fallthrough
CT: control target
= control target key end

     0   :  { %s605_s6 = smov 0   ;;  %s607_s7 = smov 0   ;;  %s710_s0 = inlined_call_operand.vmem [shape: f32[2,4,32,128], index: 0, kind: input, shape index: {}]   ;;  %s711_s1 = inlined_call_operand.vmem [shape: f32[2,4,32,128], index: 1, kind: output, shape index: {}]  }
   0x1   :  { %s609_s8 = smov 0   ;;  %s611_s9 = smov 0  }
   0x2   :  { %s613_s10 = smov 0  }
   0x3 LB: > { %s23_s11 = sadd.s32 1, %s585_s8  ;;  %s30_s12 = sadd.s32 1, %s589_s9  ;;  %s593_s10 = sphi %s613_s10, %s11_s10   ;;  %s589_s9 = sphi %s611_s9, %s715_s9   ;;  %s585_s8 = sphi %s609_s8, %s714_s8   ;;  %s581_s7 = sphi %s607_s7, %s713_s7   ;;  %s577_s6 = sphi %s605_s6, %s712_s6  }
   0x4   : > { %p24_p0 = scmp.ge.s32.totalorder %s23_s11, 5  ;;  %p484_p1 = scmp.ge.s32.totalorder %s593_s10, 1 }
   0x5   : > { %p137_p2 = scmp.lt.s32.totalorder %s593_s10, 11 }
   0x6   : > { %s717_s11 = smov (%p24_p0, %s23_s11), 0  ;;  %s719_s12 = smov (!%p24_p0, %s30_s12), %s589_s9 }
   0x7   : > { %p138_p3 = pnand %p484_p1, %p137_p2  ;;  %p32_p4 = scmp.ge.s32.totalorder %s719_s12, 2 }
   0x8   : > { %p178_p5 = scmp.lt.s32.totalorder (!%p138_p3), %s577_s6, 3  ;;  %p181_p6 = scmp.lt.s32.totalorder (!%p138_p3), %s581_s7, 1 }
   0x9   : > { %s721_s12 = smov (%p32_p4, %s719_s12), 0  ;;  %141 = sbr.rel (%p138_p3) target bundleno = 74 (0x4a), region = 24 }
   0xa   : > { %s491_s13 = sadd.s32 (!%p138_p3), 4294967295, %s577_s6  ;;  %p216_p7 = scmp.lt.s32.totalorder (!%p138_p3), %s577_s6, 0 }
   0xb   : > { %p197_p8 = scmp.gt.s32.totalorder (!%p138_p3), %s491_s13, 0  ;;  %p492_p9 = scmp.lt.s32.totalorder (!%p138_p3), %s491_s13, 3 }
   0xc   : > { %s217_s18 = ssub.s32 (!%p138_p3), 0, %s577_s6  ;;  %p501_p10 = scmp.ne.s32.totalorder (!%p138_p3), %s577_s6, 0 }
   0xd   : > { %s500_s20 = smin.u32 (!%p138_p3), %s577_s6, %s217_s18 }
   0xe   : > { %s179_s14 = scalar_select %p178_p5, %s577_s6, 3 }
   0xf   : > { %s723_s7 = smov (!%p181_p6, %s581_s7), 1  ;;  %s219_s24 = sand.u32 1, %s500_s20  }
  0x10   : > { %s725_s14 = smov (!%p178_p5, %s179_s14), 3  ;;  %s489_s15 = sshll.u32 %s723_s7, 4 }
  0x11   : > { %s488_s16 = sshll.u32 %s725_s14, 2  ;;  %s727_s13 = smov (!%p197_p8, %s491_s13), 0 }
  0x12   : > { %s190_s17 = sadd.s32 %s489_s15, %s488_s16  ;;  %s220_s25 = ssub.s32 0, %s219_s24 }
  0x13   : > { %s490_s19 = sshll.u32 %s190_s17, 3  ;;  %s729_s13 = smov (!%p492_p9, %s727_s13), 3 }
  0x14   : > { %s192_s23 = scalar_lea.vmem %s710_s0, %s490_s19  ;;  %s731_s25 = smov (!%p216_p7, %s220_s25), %s219_s24 }
  0x15   : > { %v646_v0 = vld [vmem:[%s192_s23] sm:$0xff]  ;;  %v648_v1 = vld [vmem:[%s192_s23 + $0x8] sm:$0xff]  ;;  %v650_v2 = vld [vmem:[%s192_s23 + $0x10] sm:$0xff]  ;;  %s497_s26 = sshll.u32 %s729_s13, 2  ;;  %229 = sbr.rel (%p501_p10) target bundleno = 47 (0x2f), region = 28 }
  0x16   : > { %v652_v3 = vld [vmem:[%s192_s23 + $0x18] sm:$0xff]  ;;  %s209_s27 = sadd.s32 %s497_s26, %s489_s15 }
  0x17   : > { %s499_s28 = sshll.u32 %s209_s27, 3 }
  0x18   : > { %s661_s2 = scalar_lea.vmem %s711_s1, %s499_s28 }
  0x1a   : > { %230 = vst [vmem:[#allocation2] sm:$0xff] %v646_v0  ;;  %231 = vst [vmem:[#allocation2 + $0x8] sm:$0xff] %v648_v1  ;;  %v239_v4 = vlaneseq }
  0x1b   : > { %232 = vst [vmem:[#allocation2 + $0x10] sm:$0xff] %v650_v2  ;;  %233 = vst [vmem:[#allocation2 + $0x18] sm:$0xff] %v652_v3 }
  0x1c   : > { %235 = vst [vmem:[#allocation2 + $0x20] sm:$0xff] %v646_v0  ;;  %236 = vst [vmem:[#allocation2 + $0x28] sm:$0xff] %v648_v1  ;;  %v240_v5 = vshrl.u32 %v239_v4, 7  ;;  %v245_v6 = vand.u32 127, %v239_v4 }
  0x1d   : > { %237 = vst [vmem:[#allocation2 + $0x30] sm:$0xff] %v650_v2  ;;  %238 = vst [vmem:[#allocation2 + $0x38] sm:$0xff] %v652_v3 }
  0x1e   : > { %v252_v7 = vmul.u32 128, %v240_v5  ;;  %v241_v8 = vadd.s32 8, %v240_v5  ;;  %v242_v9 = vadd.s32 16, %v240_v5  ;;  %v243_v10 = vadd.s32 24, %v240_v5 }
  0x20   : > { %v256_v11 = vadd.s32 %v252_v7, %v245_v6  ;;  %v253_v12 = vmul.u32 128, %v241_v8  ;;  %v254_v13 = vmul.u32 128, %v242_v9 }
  0x21   : > { %v255_v14 = vmul.u32 128, %v243_v10 }
  0x22   : > { %v261_v15 = vsub.s32 0, %v256_v11  ;;  %v257_v16 = vadd.s32 %v253_v12, %v245_v6  ;;  %v258_v17 = vadd.s32 %v254_v13, %v245_v6  ;;  %vm260_vm0 = vcmp.lt.s32.totalorder %v256_v11, 0 }
  0x23   : > { %v259_v18 = vadd.s32 %v255_v14, %v245_v6 }
  0x24   : > { %v502_v19 = vmin.u32 %v261_v15, %v256_v11  ;;  %v268_v20 = vsub.s32 0, %v257_v16  ;;  %v275_v21 = vsub.s32 0, %v258_v17  ;;  %vm267_vm1 = vcmp.lt.s32.totalorder %v257_v16, 0 }
  0x25   : > { %v282_v22 = vsub.s32 0, %v259_v18  ;;  %vm274_vm2 = vcmp.lt.s32.totalorder %v258_v17, 0  ;;  %vm281_vm3 = vcmp.lt.s32.totalorder %v259_v18, 0 }
  0x26   : > { %v264_v23 = vand.u32 31, %v502_v19  ;;  %v503_v24 = vmin.u32 %v268_v20, %v257_v16  ;;  %v504_v25 = vmin.u32 %v275_v21, %v258_v17 }
  0x27   : > { %v505_v26 = vmin.u32 %v282_v22, %v259_v18 }
  0x28   : > { %v265_v27 = vsub.s32 0, %v264_v23  ;;  %v271_v28 = vand.u32 31, %v503_v24  ;;  %v278_v29 = vand.u32 31, %v504_v25 }
  0x29   : > { %v285_v30 = vand.u32 31, %v505_v26 }
  0x2a   : > { %v266_v31 = vsel %vm260_vm0, %v265_v27, %v264_v23  ;;  %v272_v32 = vsub.s32 0, %v271_v28  ;;  %v279_v33 = vsub.s32 0, %v278_v29 }
  0x2b   : > { %288 = vst [vmem:[#allocation3 + $0x10] sm:$0xff] %v266_v31  ;;  %v286_v34 = vsub.s32 0, %v285_v30 }
  0x2c   : > { %v273_v35 = vsel %vm267_vm1, %v272_v32, %v271_v28  ;;  %v280_v36 = vsel %vm274_vm2, %v279_v33, %v278_v29 }
  0x2d   : > { %289 = vst [vmem:[#allocation3] sm:$0xff] %v273_v35  ;;  %v287_v37 = vsel %vm281_vm3, %v286_v34, %v285_v30  ;;  %290 = vst [vmem:[#allocation3 + $0x18] sm:$0xff] %v280_v36 }
  0x2e   : > { %291 = vst [vmem:[#allocation3 + $0x8] sm:$0xff] %v287_v37 }
  0x2f PF: > { %p506_p11 = scmp.le.s32.totalorder %s577_s6, 0 }
  0x30   : > { %s507_s3 = sshll.u32 (!%p506_p11), %s731_s25, 5  ;;  %s306_s4 = ssub.s32 (!%p506_p11), 1, %s731_s25 }
  0x31   : > { %295 = sbr.rel (%p506_p11) target bundleno = 74 (0x4a), region = 32  ;;  %s508_s5 = sshll.u32 (!%p506_p11), %s306_s4, 5 }
  0x32   : > { %s301_s7 = scalar_lea.vmem (!%p506_p11), [#allocation2], %s507_s3  ;;  %s308_s6 = scalar_lea.vmem (!%p506_p11), [#allocation2], %s508_s5 }
  0x33   : > { %p509_p12 = scmp.ne.s32.totalorder (!%p506_p11), %s731_s25, 0 }
  0x36   : > { %v296_v38 = vld [vmem:[#allocation3 + $0x10] sm:$0xff]  ;;  %v297_v39 = vld [vmem:[#allocation3] sm:$0xff]  ;;  %v298_v40 = vld [vmem:[#allocation3 + $0x18] sm:$0xff] }
  0x37   : > { %vm313_vm4 = vcmp.lt.s32.totalorder %v296_v38, 4  ;;  %vm317_vm5 = vcmp.lt.s32.totalorder %v296_v38, 8  ;;  %vm314_vm6 = vcmp.lt.s32.totalorder %v297_v39, 4  ;;  %vm318_vm7 = vcmp.lt.s32.totalorder %v297_v39, 8  ;;  %v302_v41 = vld [vmem:[%s301_s7] sm:$0xff]  ;;  %v303_v42 = vld [vmem:[%s301_s7 + $0x8] sm:$0xff] }
  0x38   : > { %v304_v43 = vld [vmem:[%s301_s7 + $0x10] sm:$0xff]  ;;  %vm315_vm8 = vcmp.lt.s32.totalorder %v298_v40, 4  ;;  %vm319_vm9 = vcmp.lt.s32.totalorder %v298_v40, 8  ;;  %v309_v44 = vld [vmem:[%s308_s6] sm:$0xff]  ;;  %v310_v45 = vld [vmem:[%s308_s6 + $0x8] sm:$0xff] }
  0x39   : > { %v311_v46 = vld [vmem:[%s308_s6 + $0x10] sm:$0xff]  ;;  %v321_v47 = vsel %vm317_vm5, %v646_v0, %v309_v44  ;;  %v322_v48 = vsel %vm318_vm7, %v648_v1, %v310_v45  ;;  %v299_v50 = vld [vmem:[#allocation3 + $0x8] sm:$0xff]  ;;  %v312_v51 = vld [vmem:[%s308_s6 + $0x18] sm:$0xff] }
  0x3a   : > { %v323_v49 = vsel %vm319_vm9, %v650_v2, %v311_v46  ;;  %v325_v52 = vsel %vm313_vm4, %v302_v41, %v321_v47  ;;  %v326_v53 = vsel %vm314_vm6, %v303_v42, %v322_v48  ;;  %v305_v55 = vld [vmem:[%s301_s7 + $0x18] sm:$0xff]  ;;  %vm316_vm10 = vcmp.lt.s32.totalorder %v299_v50, 4  ;;  %336 = sbr.rel (%p509_p12) target bundleno = 65 (0x41), region = 36 }
  0x3b   : > { %v327_v54 = vsel %vm315_vm8, %v304_v43, %v323_v49  ;;  %329 = vst [vmem:[%s661_s2] sm:$0xff] %v325_v52  ;;  %330 = vst [vmem:[%s661_s2 + $0x8] sm:$0xff] %v326_v53  ;;  %vm320_vm11 = vcmp.lt.s32.totalorder %v299_v50, 8 }
  0x3c   : > { %331 = vst [vmem:[%s661_s2 + $0x10] sm:$0xff] %v327_v54  ;;  %v324_v56 = vsel %vm320_vm11, %v652_v3, %v312_v51 }
  0x3d   : > { %v328_v57 = vsel %vm316_vm10, %v305_v55, %v324_v56 }
  0x3e   : > { %332 = vst [vmem:[%s661_s2 + $0x18] sm:$0xff] %v328_v57 }
  0x3f   : > { %337 = vst [vmem:[#allocation2] sm:$0xff] %v646_v0  ;;  %338 = vst [vmem:[#allocation2 + $0x8] sm:$0xff] %v648_v1 }
  0x40   : > { %339 = vst [vmem:[#allocation2 + $0x10] sm:$0xff] %v650_v2  ;;  %340 = vst [vmem:[#allocation2 + $0x18] sm:$0xff] %v652_v3 }
  0x41 PF: > { %p510_p13 = scmp.ne.s32.totalorder %s731_s25, 1 }
  0x43   : > { %344 = sbr.rel (%p510_p13) target bundleno = 74 (0x4a), region = 40 }
  0x48   : > { %346 = vst [vmem:[#allocation2 + $0x20] sm:$0xff] %v646_v0  ;;  %347 = vst [vmem:[#allocation2 + $0x28] sm:$0xff] %v648_v1 }
  0x49   : > { %348 = vst [vmem:[#allocation2 + $0x30] sm:$0xff] %v650_v2  ;;  %349 = vst [vmem:[#allocation2 + $0x38] sm:$0xff] %v652_v3 }
  0x4a PF: > { %s11_s10 = sadd.s32 1, %s593_s10   ;;  %s712_s6 = smov %s585_s8 }
  0x4b   : > { %p8_p0 = scmp.ge.s32.totalorder %s11_s10, 12   ;;  %s713_s7 = smov %s589_s9 }
  0x4c   : > { %s714_s8 = smov %s717_s11  ;;  %s715_s9 = smov %s721_s12 }
  0x4d   :  { %10 = sbr.rel (!%p8_p0) target bundleno = 3 (0x3), region = 74 }

</bundles_post_ra>
